<compile_context>
chip_gen: v5e
topology: v5e:2x2
jax: 0.10.0
libtpu: 0.0.40
codegen_flags: <defaults>
</compile_context>

<pallas_src>
import functools

import jax
import jax.numpy as jnp
from jax.experimental import pallas as pl
from jax.experimental.pallas import tpu as pltpu


def _round_up(a, b):
    return (a + b - 1) // b * b


def _tpu_vmem_capacity_bytes():
    try:
        return int(pltpu.get_tpu_info().vmem_capacity_bytes)
    except Exception:
        return 64 * 1024 * 1024  # conservative fallback (v7x per-TC VMEM)


# ---------------------------------------------------------------------------
# Kernel body
# ---------------------------------------------------------------------------

def _cn_kernel(x_ref, o_ref, *, eps, inv_nm1):
    """Block (tb, N, tk): normalize over axis=1 (the full context axis N).

    Two-pass mean / centered-sum-of-squares in f32 for numerical stability;
    the extra f32 temporaries are budgeted for in the block-size choice.
    """
    x = x_ref[...].astype(jnp.float32)
    mean = jnp.mean(x, axis=1, keepdims=True)
    centered = x - mean
    var = jnp.sum(centered * centered, axis=1, keepdims=True) * jnp.float32(inv_nm1)
    o_ref[...] = (centered * jax.lax.rsqrt(var + jnp.float32(eps))).astype(o_ref.dtype)


# ---------------------------------------------------------------------------
# Tiling heuristics
# ---------------------------------------------------------------------------

def _choose_tiling(R, N, K, itemsize, padded_target_bytes):
    """Pick (tb, tk) so one padded VMEM buffer is ~padded_target_bytes.

    VMEM footprint of a (tb, N, tk) buffer respects the (8,128) tile padding
    of the last two dims; HBM traffic stays at the nominal bytes.
    """
    n_pad = _round_up(N, 8)

    def padded_plane_bytes(tk):
        return n_pad * _round_up(tk, 128) * itemsize

    if padded_plane_bytes(K) <= padded_target_bytes:
        # A whole (N, K) plane per row fits: block rows only.
        tb = max(1, padded_target_bytes // padded_plane_bytes(K))
        # Keep at least 2 grid steps when possible (v7x megacore sharding,
        # DMA prologue/epilogue overlap).
        tb = min(tb, max(1, pl.cdiv(R, 2)))
        tk = K
    else:
        tb = 1
        if K >= 256:
            # Tile the lane axis in multiples of 128; a ragged last block is
            # handled by the cdiv grid (statistics are per (row, k) column).
            tk = max(128, (padded_target_bytes // (n_pad * itemsize)) // 128 * 128)
            tk = min(tk, K)
        else:
            # Huge-N, small-K: cannot tile K.  Take the large block under the
            # raised VMEM limit.
            # TODO(synk): two-pass accumulator grid over N for very large N.
            tk = K
    return tb, tk


# ---------------------------------------------------------------------------
# Wrapper
# ---------------------------------------------------------------------------

def context_norm(x, eps=1e-5):
    """x: (B, C, N, K). Normalize over dim=2 with unbiased variance (torch.var).

    Note: N == 1 produces NaN, exactly like torch.var(unbiased=True).
    """
    B, C, N, K = x.shape
    R = B * C
    inv_nm1 = (1.0 / (N - 1)) if N > 1 else float("nan")

    # Metadata-only reshape (merges leading dims): no HBM traffic.
    x2 = x.reshape(R, N, K)

    vmem_cap = _tpu_vmem_capacity_bytes()
    vmem_limit = min(96 * 1024 * 1024, vmem_cap * 3 // 4)   # 48 MiB v7x, 96 MiB v5e/v6e
    padded_target = max(1 * 1024 * 1024, vmem_limit // 12)  # ~4 MiB v7x, ~8 MiB v5e/v6e

    # Size against f32 (intermediates dominate even for bf16 inputs).
    itemsize = max(4, jnp.dtype(x.dtype).itemsize)
    tb, tk = _choose_tiling(R, N, K, itemsize, padded_target)
    grid = (pl.cdiv(R, tb), pl.cdiv(K, tk))

    kernel = functools.partial(_cn_kernel, eps=eps, inv_nm1=inv_nm1)
    out = pl.pallas_call(
        kernel,
        out_shape=jax.ShapeDtypeStruct((R, N, K), x.dtype),
        grid_spec=pltpu.PrefetchScalarGridSpec(
            num_scalar_prefetch=0,
            grid=grid,
            in_specs=[pl.BlockSpec((tb, N, tk), lambda i, j: (i, 0, j))],
            out_specs=pl.BlockSpec((tb, N, tk), lambda i, j: (i, 0, j)),
        ),
        compiler_params=pltpu.CompilerParams(
            dimension_semantics=("parallel", "parallel"),
            vmem_limit_bytes=vmem_limit,
        ),
    )(x2)
    return out.reshape(B, C, N, K)


# ---------------------------------------------------------------------------
# Reference & test
# ---------------------------------------------------------------------------

def _reference(x, eps=1e-5):
    xf = x.astype(jnp.float32)
    mean = jnp.mean(xf, axis=2, keepdims=True)
    var = jnp.var(xf, axis=2, keepdims=True, ddof=1)  # unbiased, like torch.var
    return ((xf - mean) / jnp.sqrt(var + eps)).astype(x.dtype)


if __name__ == "__main__":
    key = jax.random.PRNGKey(0)
    k1, k2, k3 = jax.random.split(key, 3)

    # Case 1: small K (< 128) -> native-layout blocks, lane-sparse compute is fine.
    x1 = jax.random.normal(k1, (2, 4, 16, 16), dtype=jnp.float32)
    out1 = jax.block_until_ready(context_norm(x1))
    ref1 = _reference(x1)
    assert out1.shape == x1.shape and out1.dtype == x1.dtype
    assert jnp.allclose(out1, ref1, atol=1e-5, rtol=1e-5), "mismatch (K=16)"

    # Case 2: lane-aligned K, odd R=3 -> exercises the ragged leading tail block.
    x2 = jax.random.normal(k2, (3, 1, 16, 128), dtype=jnp.float32)
    out2 = jax.block_until_ready(context_norm(x2))
    ref2 = _reference(x2)
    assert out2.shape == x2.shape and out2.dtype == x2.dtype
    assert jnp.allclose(out2, ref2, atol=1e-5, rtol=1e-5), "mismatch (ragged rows)"

    # Case 3: N not a multiple of 8, K not lane-aligned -> full-dim blocks still legal.
    x3 = jax.random.normal(k3, (2, 3, 9, 48), dtype=jnp.float32)
    out3 = jax.block_until_ready(context_norm(x3))
    ref3 = _reference(x3)
    assert out3.shape == x3.shape and out3.dtype == x3.dtype
    assert jnp.allclose(out3, ref3, atol=1e-5, rtol=1e-5), "mismatch (unaligned N/K)"

    print("KERNEL_OK")
</pallas_src>

<mosaic_0001>
module attributes {stable_mosaic.version = 11 : i64} {
  func.func @_cn_kernel(%arg0: i32, %arg1: i32, %arg2: memref<4x16x16xf32, #tpu.memory_space<vmem>>, %arg3: memref<4x16x16xf32, #tpu.memory_space<vmem>>) attributes {dimension_semantics = [#tpu.dimension_semantics<parallel>, #tpu.dimension_semantics<parallel>], iteration_bounds = array<i64: 2, 1>, scalar_prefetch = 0 : i64, scratch_operands = 0 : i64, tpu.core_type = #tpu.core_type<tc>, window_params = [{transform_indices = @transform_0, window_bounds = array<i64: 4, 16, 16>}, {transform_indices = @transform_1, window_bounds = array<i64: 4, 16, 16>}]} {
    %c0 = arith.constant 0 : index
    %c0_0 = arith.constant 0 : index
    %c0_1 = arith.constant 0 : index
    %0 = vector.load %arg2[%c0, %c0_0, %c0_1] : memref<4x16x16xf32, #tpu.memory_space<vmem>>, vector<4x16x16xf32>
    %cst = arith.constant dense<0.000000e+00> : vector<4x16xf32>
    %1 = vector.multi_reduction <add>, %0, %cst [1] : vector<4x16x16xf32> to vector<4x16xf32>
    %2 = vector.shape_cast %1 : vector<4x16xf32> to vector<4x1x16xf32>
    %cst_2 = arith.constant 1.600000e+01 : f32
    %3 = vector.broadcast %cst_2 : f32 to vector<4x1x16xf32>
    %4 = arith.divf %2, %3 : vector<4x1x16xf32>
    %5 = vector.broadcast %4 : vector<4x1x16xf32> to vector<4x16x16xf32>
    %6 = arith.subf %0, %5 : vector<4x16x16xf32>
    %7 = arith.mulf %6, %6 : vector<4x16x16xf32>
    %cst_3 = arith.constant dense<0.000000e+00> : vector<4x16xf32>
    %8 = vector.multi_reduction <add>, %7, %cst_3 [1] : vector<4x16x16xf32> to vector<4x16xf32>
    %9 = vector.shape_cast %8 : vector<4x16xf32> to vector<4x1x16xf32>
    %cst_4 = arith.constant 0.0666666701 : f32
    %10 = vector.broadcast %cst_4 : f32 to vector<4x1x16xf32>
    %11 = arith.mulf %9, %10 : vector<4x1x16xf32>
    %cst_5 = arith.constant 9.99999974E-6 : f32
    %12 = vector.broadcast %cst_5 : f32 to vector<4x1x16xf32>
    %13 = arith.addf %11, %12 : vector<4x1x16xf32>
    %14 = math.rsqrt %13 : vector<4x1x16xf32>
    %15 = vector.broadcast %14 : vector<4x1x16xf32> to vector<4x16x16xf32>
    %16 = arith.mulf %6, %15 : vector<4x16x16xf32>
    %c0_6 = arith.constant 0 : index
    %c0_7 = arith.constant 0 : index
    %c0_8 = arith.constant 0 : index
    %17 = vector.load %arg3[%c0_6, %c0_7, %c0_8] : memref<4x16x16xf32, #tpu.memory_space<vmem>>, vector<4x16x16xf32>
    tpu.vector_store %arg3[%c0_6, %c0_7, %c0_8], %16 {strides = array<i32>} : memref<4x16x16xf32, #tpu.memory_space<vmem>>, vector<4x16x16xf32>,
    return
  }
  func.func @transform_0(%arg0: i32, %arg1: i32) -> (i32, i32, i32) {
    %c0_i32 = arith.constant 0 : i32
    %c0_i32_0 = arith.constant 0 : i32
    return %arg0, %c0_i32, %arg1 : i32, i32, i32
  }
  func.func @transform_1(%arg0: i32, %arg1: i32) -> (i32, i32, i32) {
    %c0_i32 = arith.constant 0 : i32
    %c0_i32_0 = arith.constant 0 : i32
    return %arg0, %c0_i32, %arg1 : i32, i32, i32
  }
}

</mosaic_0001>

<bundles_post_ra>
// kernel: tpu_custom_call.1
= control target key start
LH: loop header
LB: loop body
LE: loop exit
PB: predicated region body
PF: predicated region fallthrough
CT: control target
= control target key end

     0   :  { %6 = vsyncpa [#allocation3], 0  ;;  %s848_s0 = inlined_call_operand.hbm [shape: f32[8,16,16], index: 0, kind: input, shape index: {}]   ;;  %s849_s1 = inlined_call_operand.hbm [shape: f32[8,16,16], index: 1, kind: output, shape index: {}]  }
   0x1   :  { %8 = vsyncpa [#allocation3 + $0x1], 0 }
   0x2   :  { %9 = vsyncpa [#allocation4], 0 }
   0x3   :  { %11 = vsyncpa [#allocation4 + $0x1], 0  ;;  %s659_s6 = smov 0   ;;  %s661_s7 = smov 0  }
   0x4   :  { %s663_s8 = smov 0   ;;  %s665_s9 = smov 0  }
   0x5   :  { %s667_s10 = smov 0   ;;  %s669_s11 = smov 0  }
   0x6 LB: > { %s432_s12 = sadd.s32 4294967295, %s642_s11   ;;  %s433_s13 = sadd.s32 4294967294, %s642_s11   ;;  %s642_s11 = sphi %s669_s11, %s17_s11   ;;  %s638_s10 = sphi %s667_s10, %s858_s10   ;;  %s634_s9 = sphi %s665_s9, %s857_s9   ;;  %s630_s8 = sphi %s663_s8, %s856_s8   ;;  %s626_s7 = sphi %s661_s7, %s855_s7   ;;  %s622_s6 = sphi %s659_s6, %s854_s6  }
   0x7   : > { %s29_s14 = sadd.s32 1, %s638_s10  ;;  %s38_s15 = sadd.s32 1, %s630_s8 }
   0x8   : > { %p31_p0 = scmp.ge.s32.totalorder %s29_s14, 2  ;;  %p45_p1 = scmp.ne.s32.totalorder %s630_s8, %s626_s7 }
   0x9   : > { %p46_p2 = scmp.eq.s32.totalorder %s642_s11, 0  ;;  %p51_p3 = scmp.ne.s32.totalorder %s626_s7, %s622_s6 }
   0xa   : > { %s860_s14 = smov (%p31_p0, %s29_s14), 0  ;;  %p52_p5 = scmp.eq.s32.totalorder %s432_s12, 0 }
   0xb   : > { %p700_p4 = por %p46_p2, %p45_p1  ;;  %s33_s17 = ssub.s32 %s638_s10, %s860_s14 }
   0xc   : > { %p77_p6 = scmp.eq.s32.totalorder %s432_s12, 1  ;;  %p36_p7 = scmp.eq.s32.totalorder %s33_s17, 0 }
   0xd   : > { %p706_p8 = por %p52_p5, %p51_p3  ;;  %p83_p10 = scmp.eq.s32.totalorder %s433_s13, 1 }
   0xe   : > { %p710_p9 = por %p77_p6, %p45_p1  ;;  %p435_p12 = scmp.ge.s32.totalorder %s642_s11, 2 }
   0xf   : > { %s715_s20 = scalar_select %p36_p7, %s630_s8, %s38_s15  }
  0x10   : > { %p717_p11 = por %p83_p10, %p51_p3  ;;  %p465_p13 = scmp.lt.s32.totalorder %s642_s11, 2 }
  0x11   : > { %s103_s22 = sand.u32 1, %s630_s8   ;;  %s450_s24 = sshll.u32 %s638_s10, 6 }
  0x12   : > { %s436_s23 = sshll.u32 %s103_s22, 6  ;;  %s114_s27 = scalar_lea.hbm %s848_s0, %s450_s24 }
  0x13   : > { %s107_s28 = scalar_lea.vmem [#allocation2], %s436_s23  ;;  %s115_s30 = sshll.u32 %s114_s27, 4  ;;  %s116_s30 = int_to_ptr.hbm [resolvable:$true] %s115_s30 }
  0x14   : > { %s117_s29 = sshll.u32 %s107_s28, 4  ;;  %p458_p0 = pnand %p465_p13, %p700_p4  ;;  %s118_s29 = int_to_ptr.vmem [resolvable:$true] %s117_s29 }
  0x15   : > { %p440_p1 = scmp.ge.s32.totalorder %s642_s11, 1  ;;  %s104_s2 = scalar_lea.sflag [#allocation3], %s103_s22 }
  0x16   : > { %s644_s3 = smov 128   ;;  %s645_s4 = smov 8  }
  0x17   : > { %460 = dma.hbm_to_vmem [thread:$0]  (!%p458_p0), %s116_s30, 1024, %s118_s29, %s104_s2, %s644_s3, %s644_s3, %s645_s4  }
  0x18   : > { %p125_p2 = scmp.lt.s32.totalorder %s642_s11, 3 }
  0x1a   : > { %p126_p3 = pnand %p440_p1, %p125_p2 }
  0x1b   : > { %s733_s5 = sand.u32 (!%p126_p3), 1, %s626_s7  }
  0x1c   : > { %129 = sbr.rel (%p126_p3) target bundleno = 107 (0x6b), region = 24  ;;  %s441_s12 = sshll.u32 (!%p126_p3), %s733_s5, 6 }
  0x1d   : > { %s132_s13 = scalar_lea.sflag (!%p126_p3), [#allocation3], %s733_s5  ;;  %s135_s15 = scalar_lea.vmem (!%p126_p3), [#allocation2], %s441_s12 }
  0x21   : > { %613 = dma.done.wait (%p706_p8), %s132_s13, 1024  }
  0x22   : > { %615 = vsyncadd (%p706_p8), %s132_s13, 4294966272  ;;  %v646_v0 = vmov 16.0   ;;  %vm165_vm0 = vcmask 130048   ;;  %v157_v2 = vld [vmem:[%s135_s15] sm:$0xff]  ;;  %v158_v3 = vld [vmem:[%s135_s15 + $0x8] sm:$0xff]  ;;  %s452_s16 = sshll.u32 %s634_s9, 6 }
  0x23   : > { %520 = vrcp.f32 %v646_v0  ;;  %v159_v4 = vld [vmem:[%s135_s15 + $0x10] sm:$0xff]  ;;  %v166_v5 = vsel %vm165_vm0, %v157_v2, 0.0  ;;  %v167_v6 = vsel %vm165_vm0, %v158_v3, 0.0  ;;  %v160_v8 = vld [vmem:[%s135_s15 + $0x18] sm:$0xff]  ;;  %v161_v9 = vld [vmem:[%s135_s15 + $0x20] sm:$0xff]  ;;  %s343_s9 = scalar_lea.hbm %s849_s1, %s452_s16  ;;  %s154_s22 = scalar_lea.vmem [#allocation5], %s441_s12 }
  0x24   : > { %v162_v10 = vld [vmem:[%s135_s15 + $0x28] sm:$0xff]  ;;  %v168_v11 = vadd.f32 %v167_v6, %v166_v5  ;;  %v175_v12 = vsel %vm165_vm0, %v159_v4, 0.0  ;;  %v176_v13 = vsel %vm165_vm0, %v160_v8, 0.0  ;;  %v184_v14 = vsel %vm165_vm0, %v161_v9, 0.0  ;;  %v163_v15 = vld [vmem:[%s135_s15 + $0x30] sm:$0xff]  ;;  %v164_v16 = vld [vmem:[%s135_s15 + $0x38] sm:$0xff] }
  0x25   : > { %v177_v18 = vadd.f32 %v176_v13, %v175_v12  ;;  %v185_v19 = vsel %vm165_vm0, %v162_v10, 0.0  ;;  %v193_v20 = vsel %vm165_vm0, %v163_v15, 0.0  ;;  %v194_v23 = vsel %vm165_vm0, %v164_v16, 0.0  ;;  %s344_s23 = sshll.u32 %s154_s22, 4  ;;  %s346_s24 = sshll.u32 %s343_s9, 4  ;;  %s345_s23 = int_to_ptr.vmem [resolvable:$true] %s344_s23  ;;  %s347_s24 = int_to_ptr.hbm [resolvable:$true] %s346_s24 }
  0x26   : > { %v169_v21 = vrot.slane %v168_v11, 4  ;;  %v186_v22 = vadd.f32 %v185_v19, %v184_v14  ;;  %v195_v26 = vadd.f32 %v194_v23, %v193_v20  ;;  %s330_s25 = scalar_lea.sflag [#allocation4], %s733_s5  ;;  %s574_s26 = sshra.s32 %s347_s24, 4  ;;  %s575_s26 = int_to_ptr.hbm [resolvable:$true] %s574_s26 }
  0x27   : > { %v178_v25 = vrot.slane %v177_v18, 4  ;;  %s576_s27 = scalar_lea.hbm %s575_s26, 64  ;;  %s580_s30 = scalar_lea.hbm %s849_s1, 128 }
  0x28   : > { %v170_v27 = vadd.f32 %v169_v21, %v168_v11  ;;  %v187_v28 = vrot.slane %v186_v22, 4  ;;  %v196_v30 = vrot.slane %v195_v26, 4  ;;  %p577_p4 = scmp.ne.s32.totalorder %s575_s26, %s576_s27  ;;  %p581_p7 = scmp.lt.s32.totalorder %s575_s26, %s849_s1 }
  0x29   : > { %v521_v1 = vpop.eup %520  ;;  %v179_v29 = vadd.f32 %v178_v25, %v177_v18  ;;  %p582_p8 = scmp.lt.s32.totalorder %s580_s30, %s576_s27 }
  0x2a   : > { %v203_v7 = vmul.f32 16.0, %v521_v1  ;;  %v171_v31 = vrot.slane %v170_v27, 2  ;;  %v188_v32 = vadd.f32 %v187_v28, %v186_v22  ;;  %v197_v35 = vadd.f32 %v196_v30, %v195_v26  ;;  %p578_p5 = pnand %p577_p4, %p710_p9 }
  0x2b   : > { %v180_v34 = vrot.slane %v179_v29, 2  ;;  %vm207_vm1 = vweird.f32 %v521_v1  ;;  %p583_p10 = por %p582_p8, %p581_p7 }
  0x2c   : > { %v204_v17 = vsub.f32 1.0, %v203_v7  ;;  %v172_v36 = vadd.f32 %v171_v31, %v170_v27  ;;  %v189_v37 = vrot.slane %v188_v32, 2  ;;  %v198_v39 = vrot.slane %v197_v35, 2  ;;  %p579_p6 = pneg %p578_p5 }
  0x2d   : > { %v181_v38 = vadd.f32 %v180_v34, %v179_v29 }
  0x2e   : > { %v205_v24 = vmul.f32 %v521_v1, %v204_v17  ;;  %v173_v40 = vrot.slane %v172_v36, 1  ;;  %v190_v41 = vadd.f32 %v189_v37, %v188_v32  ;;  %v199_v44 = vadd.f32 %v198_v39, %v197_v35  ;;  %p584_p13 = pnand %p583_p10, %p579_p6 }
  0x2f   : > { %v182_v43 = vrot.slane %v181_v38, 1 }
  0x30   : > { %v206_v33 = vadd.f32 %v521_v1, %v205_v24  ;;  %v174_v45 = vadd.f32 %v173_v40, %v172_v36  ;;  %v191_v46 = vrot.slane %v190_v41, 1  ;;  %v200_v48 = vrot.slane %v199_v44, 1 }
  0x31   : > { %v183_v47 = vadd.f32 %v182_v43, %v181_v38 }
  0x32   : > { %v208_v42 = vsel %vm207_vm1, %v521_v1, %v206_v33  ;;  %v192_v50 = vadd.f32 %v191_v46, %v190_v41  ;;  %v201_v52 = vadd.f32 %v200_v48, %v199_v44 }
  0x33   : > { %v209_v49 = vmul.f32 %v208_v42, %v174_v45  ;;  %v210_v51 = vmul.f32 %v208_v42, %v183_v47 }
  0x34   : > { %v211_v55 = vmul.f32 %v208_v42, %v192_v50  ;;  %v212_v58 = vmul.f32 %v208_v42, %v201_v52 }
  0x35   : > { %v751_v53 = vsub.f32 %v157_v2, %v209_v49  ;;  %v753_v54 = vsub.f32 %v158_v3, %v209_v49  ;;  %v755_v56 = vsub.f32 %v159_v4, %v210_v51  ;;  %v757_v57 = vsub.f32 %v160_v8, %v210_v51 }
  0x36   : > { %v763_v61 = vsub.f32 %v161_v9, %v211_v55  ;;  %v765_v62 = vsub.f32 %v162_v10, %v211_v55  ;;  %v771_v1 = vsub.f32 %v163_v15, %v212_v58  ;;  %v773_v2 = vsub.f32 %v164_v16, %v212_v58 }
  0x37   : > { %v221_v59 = vmul.f32 %v751_v53, %v751_v53  ;;  %v222_v60 = vmul.f32 %v753_v54, %v753_v54  ;;  %v223_v63 = vmul.f32 %v755_v56, %v755_v56  ;;  %v224_v0 = vmul.f32 %v757_v57, %v757_v57 }
  0x38   : > { %v225_v5 = vmul.f32 %v763_v61, %v763_v61  ;;  %v226_v6 = vmul.f32 %v765_v62, %v765_v62  ;;  %v227_v10 = vmul.f32 %v771_v1, %v771_v1  ;;  %v228_v14 = vmul.f32 %v773_v2, %v773_v2 }
  0x39   : > { %v229_v3 = vsel %vm165_vm0, %v221_v59, 0.0  ;;  %v230_v4 = vsel %vm165_vm0, %v222_v60, 0.0  ;;  %v238_v8 = vsel %vm165_vm0, %v223_v63, 0.0  ;;  %v239_v9 = vsel %vm165_vm0, %v224_v0, 0.0 }
  0x3a   : > { %v231_v7 = vadd.f32 %v230_v4, %v229_v3  ;;  %v240_v11 = vadd.f32 %v239_v9, %v238_v8  ;;  %v247_v12 = vsel %vm165_vm0, %v225_v5, 0.0  ;;  %v248_v13 = vsel %vm165_vm0, %v226_v6, 0.0 }
  0x3b   : > { %v249_v16 = vadd.f32 %v248_v13, %v247_v12  ;;  %v256_v17 = vsel %vm165_vm0, %v227_v10, 0.0  ;;  %v257_v19 = vsel %vm165_vm0, %v228_v14, 0.0 }
  0x3c   : > { %v232_v15 = vrot.slane %v231_v7, 4  ;;  %v241_v18 = vrot.slane %v240_v11, 4  ;;  %v258_v22 = vadd.f32 %v257_v19, %v256_v17 }
  0x3d   : > { %v250_v21 = vrot.slane %v249_v16, 4 }
  0x3e   : > { %v233_v20 = vadd.f32 %v232_v15, %v231_v7  ;;  %v242_v23 = vadd.f32 %v241_v18, %v240_v11  ;;  %v259_v26 = vrot.slane %v258_v22, 4 }
  0x3f   : > { %v251_v25 = vadd.f32 %v250_v21, %v249_v16 }
  0x40   : > { %v234_v24 = vrot.slane %v233_v20, 2  ;;  %v243_v27 = vrot.slane %v242_v23, 2  ;;  %v260_v30 = vadd.f32 %v259_v26, %v258_v22 }
  0x41   : > { %v252_v29 = vrot.slane %v251_v25, 2 }
  0x42   : > { %v235_v28 = vadd.f32 %v234_v24, %v233_v20  ;;  %v244_v31 = vadd.f32 %v243_v27, %v242_v23  ;;  %v261_v34 = vrot.slane %v260_v30, 2 }
  0x43   : > { %v253_v33 = vadd.f32 %v252_v29, %v251_v25 }
  0x44   : > { %v236_v32 = vrot.slane %v235_v28, 1  ;;  %v245_v35 = vrot.slane %v244_v31, 1  ;;  %v262_v38 = vadd.f32 %v261_v34, %v260_v30 }
  0x45   : > { %v254_v37 = vrot.slane %v253_v33, 1 }
  0x46   : > { %v237_v36 = vadd.f32 %v236_v32, %v235_v28  ;;  %v246_v39 = vadd.f32 %v245_v35, %v244_v31  ;;  %v263_v42 = vrot.slane %v262_v38, 1 }
  0x47   : > { %v255_v41 = vadd.f32 %v254_v37, %v253_v33 }
  0x48   : > { %v265_v40 = vmul.f32 0.06666667, %v237_v36  ;;  %v266_v43 = vmul.f32 0.06666667, %v246_v39  ;;  %v264_v46 = vadd.f32 %v263_v42, %v262_v38 }
  0x49   : > { %v267_v45 = vmul.f32 0.06666667, %v255_v41 }
  0x4a   : > { %v269_v44 = vadd.f32 1e-05, %v265_v40  ;;  %v270_v47 = vadd.f32 1e-05, %v266_v43  ;;  %v268_v49 = vmul.f32 0.06666667, %v264_v46 }
  0x4b   : > { %v271_v48 = vadd.f32 1e-05, %v267_v45 }
  0x4c   : > { %522 = vrsqrt.f32 %v269_v44  ;;  %v272_v50 = vadd.f32 1e-05, %v268_v49  ;;  %vm279_vm2 = vweird.f32 %v269_v44  ;;  %vm289_vm4 = vweird.f32 %v270_v47 }
  0x4d   : > { %524 = vrsqrt.f32 %v270_v47  ;;  %vm299_vm6 = vweird.f32 %v271_v48 }
  0x4e   : > { %526 = vrsqrt.f32 %v271_v48  ;;  %vm309_vm9 = vweird.f32 %v272_v50 }
  0x4f   : > { %528 = vrsqrt.f32 %v272_v50 }
  0x52   : > { %v523_v51 = vpop.eup %522 }
  0x53   : > { %v525_v52 = vpop.eup %524  ;;  %v274_v55 = vmul.f32 %v523_v51, %v269_v44  ;;  %vm280_vm3 = vweird.f32 %v523_v51 }
  0x54   : > { %v527_v58 = vpop.eup %526  ;;  %v284_v59 = vmul.f32 %v525_v52, %v270_v47  ;;  %vm290_vm5 = vweird.f32 %v525_v52  ;;  %vm281_vm8 = vmor %vm279_vm2, %vm280_vm3 }
  0x55   : > { %v275_v60 = vmul.f32 %v523_v51, %v274_v55  ;;  %v294_v63 = vmul.f32 %v527_v58, %v271_v48  ;;  %v529_v0 = vpop.eup %528  ;;  %vm300_vm7 = vweird.f32 %v527_v58  ;;  %vm291_vm10 = vmor %vm289_vm4, %vm290_vm5 }
  0x56   : > { %v285_v3 = vmul.f32 %v525_v52, %v284_v59  ;;  %v304_v6 = vmul.f32 %v529_v0, %v272_v50  ;;  %vm310_vm11 = vweird.f32 %v529_v0  ;;  %vm301_vm12 = vmor %vm299_vm6, %vm300_vm7 }
  0x57   : > { %v276_v4 = vmul.f32 0.5, %v275_v60  ;;  %v295_v5 = vmul.f32 %v527_v58, %v294_v63  ;;  %vm311_vm13 = vmor %vm309_vm9, %vm310_vm11 }
  0x58   : > { %v286_v7 = vmul.f32 0.5, %v285_v3  ;;  %v305_v10 = vmul.f32 %v529_v0, %v304_v6 }
  0x59   : > { %v277_v8 = vsub.f32 1.5, %v276_v4  ;;  %v296_v9 = vmul.f32 0.5, %v295_v5 }
  0x5a   : > { %v287_v11 = vsub.f32 1.5, %v286_v7  ;;  %v306_v14 = vmul.f32 0.5, %v305_v10 }
  0x5b   : > { %v278_v12 = vmul.f32 %v523_v51, %v277_v8  ;;  %v297_v13 = vsub.f32 1.5, %v296_v9 }
  0x5c   : > { %v288_v15 = vmul.f32 %v525_v52, %v287_v11  ;;  %v307_v18 = vsub.f32 1.5, %v306_v14 }
  0x5d   : > { %v282_v16 = vsel %vm281_vm8, %v523_v51, %v278_v12  ;;  %v298_v17 = vmul.f32 %v527_v58, %v297_v13 }
  0x5e   : > { %v313_v19 = vmul.f32 %v282_v16, %v751_v53  ;;  %v314_v20 = vmul.f32 %v282_v16, %v753_v54  ;;  %v292_v21 = vsel %vm291_vm10, %v525_v52, %v288_v15  ;;  %v308_v25 = vmul.f32 %v529_v0, %v307_v18 }
  0x5f   : > { %v315_v22 = vmul.f32 %v292_v21, %v755_v56  ;;  %v316_v23 = vmul.f32 %v292_v21, %v757_v57  ;;  %v302_v24 = vsel %vm301_vm12, %v527_v58, %v298_v17 }
  0x60   : > { %321 = vst.msk [vmem:[%s154_s22] sm:$0xff] %vm165_vm0, %v313_v19  ;;  %v317_v53 = vmul.f32 %v302_v24, %v763_v61  ;;  %v318_v54 = vmul.f32 %v302_v24, %v765_v62  ;;  %v312_v56 = vsel %vm311_vm13, %v529_v0, %v308_v25 }
  0x61   : > { %322 = vst.msk [vmem:[%s154_s22 + $0x8] sm:$0xff] %vm165_vm0, %v314_v20  ;;  %v319_v57 = vmul.f32 %v312_v56, %v771_v1  ;;  %v320_v26 = vmul.f32 %v312_v56, %v773_v2 }
  0x62   : > { %323 = vst.msk [vmem:[%s154_s22 + $0x10] sm:$0xff] %vm165_vm0, %v315_v22 }
  0x63   : > { %324 = vst.msk [vmem:[%s154_s22 + $0x18] sm:$0xff] %vm165_vm0, %v316_v23 }
  0x64   : > { %325 = vst.msk [vmem:[%s154_s22 + $0x20] sm:$0xff] %vm165_vm0, %v317_v53 }
  0x65   : > { %326 = vst.msk [vmem:[%s154_s22 + $0x28] sm:$0xff] %vm165_vm0, %v318_v54 }
  0x66   : > { %327 = vst.msk [vmem:[%s154_s22 + $0x30] sm:$0xff] %vm165_vm0, %v319_v57 }
  0x67   : > { %328 = vst.msk [vmem:[%s154_s22 + $0x38] sm:$0xff] %vm165_vm0, %v320_v26 }
  0x68   : > { %587 = shalt.err (!%p584_p13)
}
  0x69   : > { %s647_s4 = smov 128   ;;  %s648_s5 = smov 8  }
  0x6a   : > { %455 = dma.vmem_to_hbm [thread:$0]  (%p710_p9), %s345_s23, 1024, %s347_s24, %s330_s25, %s647_s4, %s647_s4, %s648_s5  }
  0x6b PF: > { %s361_s12 = sand.u32 1, %s622_s6   ;;  %p462_p0 = pnand %p435_p12, %p717_p11 }
  0x6c   : > { %s362_s13 = scalar_lea.sflag [#allocation4], %s361_s12 }
  0x6d   : > { %p463_p1 = pneg %p462_p0 }
  0x6f   : > { %617 = dma.done.wait (%p463_p1), %s362_s13, 1024  }
  0x70   : > { %619 = vsyncadd (%p463_p1), %s362_s13, 4294966272  ;;  %s17_s11 = sadd.s32 1, %s642_s11   ;;  %s854_s6 = smov %s626_s7 }
  0x71   : > { %p14_p2 = scmp.ge.s32.totalorder %s17_s11, 4   ;;  %s855_s7 = smov %s630_s8 }
  0x72   : > { %s856_s8 = smov %s715_s20  ;;  %s857_s9 = smov %s638_s10 }
  0x73   : > { %s858_s10 = smov %s860_s14  ;;  %16 = sbr.rel (!%p14_p2) target bundleno = 6 (0x6), region = 69 }
  0x78   :  { %368 = vsyncpa [#allocation3], 1 }
  0x79   :  { %370 = vsyncpa [#allocation3 + $0x1], 1 }
  0x7a   :  { %371 = vsyncpa [#allocation4], 1 }
  0x7b   :  { %373 = vsyncpa [#allocation4 + $0x1], 1 }

</bundles_post_ra>
